<compile_context>
chip_gen: v7x
topology: tpu7x:2x2x1
jax: 0.10.0
libtpu: 0.0.40
codegen_flags: <defaults>
</compile_context>

<pallas_src>
import functools

import jax
import jax.numpy as jnp
from jax import lax
from jax.experimental import pallas as pl
from jax.experimental.pallas import tpu as pltpu

_TARGET_BLOCK_ELEMS = 512 * 1024        # ~2 MiB per f32 block
_VMEM_LIMIT = 32 * 1024 * 1024          # safe on v5e / v6e / v7x
_LANE_CANDIDATES = (4096, 2048, 1024, 512, 256, 128)


def _focal_terms(x, t, alpha, gamma):
    """Elementwise binary focal loss; x, t already float32.

    Log-space formulation:
        log_p  = log sigmoid(x)
        log_np = log sigmoid(-x) = log_p - x
        sigmoid(-x)**g = exp(g*log_np);  sigmoid(x)**g = exp(g*log_p)
    """
    log_p = jax.nn.log_sigmoid(x)
    log_np = log_p - x
    pow_neg = jnp.exp(gamma * log_np)     # sigmoid(-x) ** gamma
    pow_pos = jnp.exp(gamma * log_p)      # sigmoid(x)  ** gamma
    return (-alpha * pow_neg * t * log_p
            - (1.0 - alpha) * pow_pos * (1.0 - t) * log_np)


def _none_kernel(x_ref, t_ref, o_ref, *, alpha, gamma):
    x = x_ref[...].astype(jnp.float32)
    t = t_ref[...].astype(jnp.float32)
    o_ref[...] = _focal_terms(x, t, alpha, gamma).astype(o_ref.dtype)


def _reduce_kernel(x_ref, t_ref, o_ref, acc_ref, *,
                   alpha, gamma, n, block_elems, width, k_blocks):
    k = pl.program_id(1)

    @pl.when(k == 0)
    def _():
        acc_ref[...] = jnp.zeros_like(acc_ref)

    x = x_ref[...].astype(jnp.float32)
    t = t_ref[...].astype(jnp.float32)
    loss = _focal_terms(x, t, alpha, gamma)

    # global block id and number of valid elements in this block
    # (int32 math — fine for < 2^31 elements)
    blk = pl.program_id(0) * k_blocks + k
    tail = n - blk * block_elems

    @pl.when(tail >= block_elems)          # full block: plain VPU accumulate
    def _():
        acc_ref[...] += loss

    @pl.when(tail < block_elems)           # ragged / duplicated tail block
    def _():
        row = lax.broadcasted_iota(jnp.int32, loss.shape, 0)
        col = lax.broadcasted_iota(jnp.int32, loss.shape, 1)
        idx = row * width + col
        acc_ref[...] += jnp.where(idx < tail, loss, 0.0)

    @pl.when(k == k_blocks - 1)            # single cross-lane reduce at the end
    def _():
        o_ref[0, 0, 0] = jnp.sum(acc_ref[...])


def _choose_layout(n):
    """Widest lane width dividing n (zero-copy reshape) else small pad."""
    for w in _LANE_CANDIDATES:
        if n % w == 0:
            return w, 0
    w = 512
    return w, (-n) % w


def binary_focal_loss_with_logits(x, target, alpha=0.25, gamma=2.0,
                                  reduction="none"):
    if x.ndim < 2:
        raise ValueError(f"Invalid input shape, we expect BxCx*. Got: {x.shape}")
    if x.shape[0] != target.shape[0]:
        raise ValueError(
            f"Expected input batch_size ({x.shape[0]}) to match target "
            f"batch_size ({target.shape[0]}).")
    if reduction not in ("none", "mean", "sum"):
        raise NotImplementedError(f"Invalid reduction mode: {reduction}")

    alpha = float(alpha)
    gamma = float(gamma)
    orig_shape = x.shape
    out_dtype = x.dtype
    n = x.size

    xf = x.reshape(-1)
    tf = target.reshape(-1)
    if not jnp.issubdtype(tf.dtype, jnp.floating):
        tf = tf.astype(jnp.float32)

    w, pad = _choose_layout(n)
    if pad:
        # TODO(synk): only hit when no candidate lane width divides n; this
        # rare path materializes one padded copy of the inputs.
        xf = jnp.pad(xf, (0, pad))
        tf = jnp.pad(tf, (0, pad))
    rows = (n + pad) // w
    x2 = xf.reshape(rows, w)
    t2 = tf.reshape(rows, w)

    # ~2 MiB f32 blocks; multiple of 32 rows (bf16/int8 safe) or full extent.
    block_rows = min(rows, max(32, (_TARGET_BLOCK_ELEMS // w) // 32 * 32))
    nblocks = -(-rows // block_rows)

    if reduction == "none":
        out = pl.pallas_call(
            functools.partial(_none_kernel, alpha=alpha, gamma=gamma),
            out_shape=jax.ShapeDtypeStruct((rows, w), out_dtype),
            grid_spec=pltpu.PrefetchScalarGridSpec(
                num_scalar_prefetch=0,
                grid=(nblocks,),
                in_specs=[
                    pl.BlockSpec((block_rows, w), lambda i: (i, 0)),
                    pl.BlockSpec((block_rows, w), lambda i: (i, 0)),
                ],
                out_specs=pl.BlockSpec((block_rows, w), lambda i: (i, 0)),
            ),
            compiler_params=pltpu.CompilerParams(
                dimension_semantics=("parallel",),
                vmem_limit_bytes=_VMEM_LIMIT),
        )(x2, t2)
        out = out.reshape(-1)
        if pad:
            out = out[:n]
        return out.reshape(orig_shape)

    # mean / sum: per-shard sequential accumulation; 2 shards so the
    # reduction can use both TensorCores on v7x.
    np_shards = 2 if nblocks >= 2 else 1
    k_blocks = -(-nblocks // np_shards)
    block_elems = block_rows * w

    def in_map(p, k):
        # clamp so the overhang block of an uneven 2-way split stays in
        # bounds; its contribution is masked to zero inside the kernel.
        return (jnp.minimum(p * k_blocks + k, nblocks - 1), 0)

    partials = pl.pallas_call(
        functools.partial(_reduce_kernel, alpha=alpha, gamma=gamma, n=n,
                          block_elems=block_elems, width=w, k_blocks=k_blocks),
        out_shape=jax.ShapeDtypeStruct((np_shards, 1, 1), jnp.float32),
        grid_spec=pltpu.PrefetchScalarGridSpec(
            num_scalar_prefetch=0,
            grid=(np_shards, k_blocks),
            in_specs=[
                pl.BlockSpec((block_rows, w), in_map),
                pl.BlockSpec((block_rows, w), in_map),
            ],
            out_specs=pl.BlockSpec((1, 1, 1), lambda p, k: (p, 0, 0)),
            scratch_shapes=[pltpu.VMEM((block_rows, w), jnp.float32)],
        ),
        compiler_params=pltpu.CompilerParams(
            dimension_semantics=("parallel", "arbitrary"),
            vmem_limit_bytes=_VMEM_LIMIT),
    )(x2, t2)

    total = jnp.sum(partials)
    if reduction == "sum":
        return total.astype(out_dtype)
    return (total / jnp.float32(n)).astype(out_dtype)


class BinaryFocalLossWithLogits:
    """JAX/Pallas port of the PyTorch BinaryFocalLossWithLogits module."""

    def __init__(self, alpha: float, gamma: float = 2.0,
                 reduction: str = "none") -> None:
        self.alpha = alpha
        self.gamma = gamma
        self.reduction = reduction

    def __call__(self, input, target):
        return binary_focal_loss_with_logits(
            input, target, self.alpha, self.gamma, self.reduction)


def _reference(x, t, alpha, gamma, reduction):
    # Direct port of the PyTorch formulation (sigmoid + pow) for validation.
    x = x.astype(jnp.float32)
    t = t.astype(jnp.float32)
    p_pos = jax.nn.sigmoid(x)
    p_neg = jax.nn.sigmoid(-x)
    loss = (-alpha * jnp.power(p_neg, gamma) * t * jax.nn.log_sigmoid(x)
            - (1.0 - alpha) * jnp.power(p_pos, gamma) * (1.0 - t)
            * jax.nn.log_sigmoid(-x))
    if reduction == "mean":
        return jnp.mean(loss)
    if reduction == "sum":
        return jnp.sum(loss)
    return loss


if __name__ == "__main__":
    key = jax.random.PRNGKey(0)
    k_x, k_t = jax.random.split(key)

    # NCHW-shaped logits and binary targets (module accepts (N, *))
    x = jax.random.normal(k_x, (2, 4, 16, 16), dtype=jnp.float32) * 3.0
    target = jax.random.bernoulli(k_t, p=0.3, shape=(2, 4, 16, 16)).astype(
        jnp.float32)

    ok = True
    for reduction in ("none", "mean", "sum"):
        loss_fn = BinaryFocalLossWithLogits(alpha=0.25, gamma=2.0,
                                            reduction=reduction)
        out = jax.block_until_ready(loss_fn(x, target))
        ref = _reference(x, target, 0.25, 2.0, reduction)
        if not jnp.allclose(out, ref, rtol=1e-4, atol=1e-5):
            ok = False
            print(f"MISMATCH for reduction={reduction}")

    if ok:
        print("KERNEL_OK")
</pallas_src>

<mosaic_0001>
module attributes {stable_mosaic.version = 11 : i64} {
  func.func @_none_kernel(%arg0: i32, %arg1: memref<1x2048xf32, #tpu.memory_space<vmem>>, %arg2: memref<1x2048xf32, #tpu.memory_space<vmem>>, %arg3: memref<1x2048xf32, #tpu.memory_space<vmem>>) attributes {dimension_semantics = [#tpu.dimension_semantics<parallel>], iteration_bounds = array<i64: 1>, scalar_prefetch = 0 : i64, scratch_operands = 0 : i64, tpu.core_type = #tpu.core_type<tc>, window_params = [{transform_indices = @transform_0, window_bounds = array<i64: 1, 2048>}, {transform_indices = @transform_1, window_bounds = array<i64: 1, 2048>}, {transform_indices = @transform_2, window_bounds = array<i64: 1, 2048>}]} {
    %c0 = arith.constant 0 : index
    %c0_0 = arith.constant 0 : index
    %0 = vector.load %arg1[%c0, %c0_0] : memref<1x2048xf32, #tpu.memory_space<vmem>>, vector<1x2048xf32>
    %c0_1 = arith.constant 0 : index
    %c0_2 = arith.constant 0 : index
    %1 = vector.load %arg2[%c0_1, %c0_2] : memref<1x2048xf32, #tpu.memory_space<vmem>>, vector<1x2048xf32>
    %cst = arith.constant 0.000000e+00 : f32
    %2 = vector.broadcast %cst : f32 to vector<1x2048xf32>
    %3 = arith.subf %2, %0 : vector<1x2048xf32>
    %cst_3 = arith.constant 0.000000e+00 : f32
    %4 = vector.broadcast %cst_3 : f32 to vector<1x2048xf32>
    %5 = arith.maximumf %3, %4 : vector<1x2048xf32>
    %6 = vector.broadcast %cst_3 : f32 to vector<1x2048xf32>
    %7 = arith.subf %3, %6 : vector<1x2048xf32>
    %8 = arith.cmpf one, %7, %7 : vector<1x2048xf32>
    %9 = vector.broadcast %cst_3 : f32 to vector<1x2048xf32>
    %10 = arith.addf %3, %9 : vector<1x2048xf32>
    %11 = math.absf %7 : vector<1x2048xf32>
    %cst_4 = arith.constant 0.000000e+00 : f32
    %12 = vector.broadcast %cst_4 : f32 to vector<1x2048xf32>
    %13 = arith.subf %12, %11 : vector<1x2048xf32>
    %14 = math.exp %13 : vector<1x2048xf32>
    %15 = math.log1p %14 : vector<1x2048xf32>
    %16 = arith.addf %5, %15 : vector<1x2048xf32>
    %17 = arith.select %8, %10, %16 : vector<1x2048xi1>, vector<1x2048xf32>
    %cst_5 = arith.constant 0.000000e+00 : f32
    %18 = vector.broadcast %cst_5 : f32 to vector<1x2048xf32>
    %19 = arith.subf %18, %17 : vector<1x2048xf32>
    %20 = arith.subf %19, %0 : vector<1x2048xf32>
    %cst_6 = arith.constant 2.000000e+00 : f32
    %21 = vector.broadcast %cst_6 : f32 to vector<1x2048xf32>
    %22 = arith.mulf %21, %20 : vector<1x2048xf32>
    %23 = math.exp %22 : vector<1x2048xf32>
    %cst_7 = arith.constant 2.000000e+00 : f32
    %24 = vector.broadcast %cst_7 : f32 to vector<1x2048xf32>
    %25 = arith.mulf %24, %19 : vector<1x2048xf32>
    %26 = math.exp %25 : vector<1x2048xf32>
    %cst_8 = arith.constant -2.500000e-01 : f32
    %27 = vector.broadcast %cst_8 : f32 to vector<1x2048xf32>
    %28 = arith.mulf %27, %23 : vector<1x2048xf32>
    %29 = arith.mulf %28, %1 : vector<1x2048xf32>
    %30 = arith.mulf %29, %19 : vector<1x2048xf32>
    %cst_9 = arith.constant 7.500000e-01 : f32
    %31 = vector.broadcast %cst_9 : f32 to vector<1x2048xf32>
    %32 = arith.mulf %31, %26 : vector<1x2048xf32>
    %cst_10 = arith.constant 1.000000e+00 : f32
    %33 = vector.broadcast %cst_10 : f32 to vector<1x2048xf32>
    %34 = arith.subf %33, %1 : vector<1x2048xf32>
    %35 = arith.mulf %32, %34 : vector<1x2048xf32>
    %36 = arith.mulf %35, %20 : vector<1x2048xf32>
    %37 = arith.subf %30, %36 : vector<1x2048xf32>
    %c0_11 = arith.constant 0 : index
    %c0_12 = arith.constant 0 : index
    %38 = vector.load %arg3[%c0_11, %c0_12] : memref<1x2048xf32, #tpu.memory_space<vmem>>, vector<1x2048xf32>
    tpu.vector_store %arg3[%c0_11, %c0_12], %37 {strides = array<i32>} : memref<1x2048xf32, #tpu.memory_space<vmem>>, vector<1x2048xf32>,
    return
  }
  func.func @transform_0(%arg0: i32) -> (i32, i32) {
    %c0_i32 = arith.constant 0 : i32
    %c0_i32_0 = arith.constant 0 : i32
    return %arg0, %c0_i32 : i32, i32
  }
  func.func @transform_1(%arg0: i32) -> (i32, i32) {
    %c0_i32 = arith.constant 0 : i32
    %c0_i32_0 = arith.constant 0 : i32
    return %arg0, %c0_i32 : i32, i32
  }
  func.func @transform_2(%arg0: i32) -> (i32, i32) {
    %c0_i32 = arith.constant 0 : i32
    %c0_i32_0 = arith.constant 0 : i32
    return %arg0, %c0_i32 : i32, i32
  }
}

</mosaic_0001>

<bundles_post_ra>
// kernel: tpu_custom_call.1
= control target key start
LH: loop header
LB: loop body
LE: loop exit
PB: predicated region body
PF: predicated region fallthrough
CT: control target
= control target key end

     0   :  { %7 = vsyncpa [#allocation3], 0  ;;  %s273_s0 = inlined_call_operand.hbm [shape: f32[1,2048], index: 0, kind: input, shape index: {}]   ;;  %s274_s1 = inlined_call_operand.hbm [shape: f32[1,2048], index: 1, kind: input, shape index: {}]   ;;  %s275_s2 = inlined_call_operand.hbm [shape: f32[1,2048], index: 2, kind: output, shape index: {}]  }
   0x1   :  { %8 = vsyncpa [#allocation6], 0 }
   0x2   :  { %9 = vsyncpa [#allocation4], 0  ;;  %s219_s9 = smov [#allocation2]   ;;  %s220_s11 = smov [#allocation5]  }
   0x3   :  { %s16_s10 = sshll.u32 %s219_s9, 4  ;;  %s26_s12 = sshll.u32 %s220_s11, 4  ;;  %s17_s10 = int_to_ptr.vmem [resolvable:$true] %s16_s10  ;;  %s27_s12 = int_to_ptr.vmem [resolvable:$true] %s26_s12 }
   0x4   :  { %s147_s15 = scalar_lea.hbm %s273_s0, 256 }
   0x5   :  { %p148_p0 = scmp.ne.s32.totalorder %s273_s0, %s147_s15  ;;  %p151_p1 = scmp.lt.u32.totalorder %s147_s15, %s273_s0 }
   0x7   :  { %p153_p2 = pnand %p151_p1, %p148_p0 }
   0x9   :  { %156 = shalt.err (!%p153_p2)
}
   0xa   :  { %s157_s20 = scalar_lea.vmem %s17_s10, 256  ;;  %p162_p4 = scmp.lt.s32.totalorder %s17_s10, %s17_s10 }
   0xb   :  { %p158_p3 = scmp.ne.s32.totalorder %s17_s10, %s157_s20  ;;  %p163_p5 = scmp.lt.s32.totalorder %s157_s20, %s157_s20 }
   0xd   :  { %p164_p6 = por %p163_p5, %p162_p4 }
   0xf   :  { %p165_p7 = pnand %p164_p6, %p158_p3 }
  0x11   :  { %168 = shalt.err (!%p165_p7)
}
  0x12   :  { %19 = dma.hbm_to_vmem [thread:$0]  %s273_s0, 256, %s17_s10, [#allocation3]  }
  0x13   :  { %s169_s25 = scalar_lea.hbm %s274_s1, 256 }
  0x14   :  { %p170_p8 = scmp.ne.s32.totalorder %s274_s1, %s169_s25  ;;  %p173_p9 = scmp.lt.u32.totalorder %s169_s25, %s274_s1 }
  0x16   :  { %p175_p10 = pnand %p173_p9, %p170_p8 }
  0x18   :  { %178 = shalt.err (!%p175_p10)
}
  0x19   :  { %s179_s30 = scalar_lea.vmem %s27_s12, 256  ;;  %p184_p12 = scmp.lt.s32.totalorder %s27_s12, %s27_s12 }
  0x1a   :  { %p180_p11 = scmp.ne.s32.totalorder %s27_s12, %s179_s30  ;;  %p185_p13 = scmp.lt.s32.totalorder %s179_s30, %s179_s30 }
  0x1c   :  { %p186_p0 = por %p185_p13, %p184_p12 }
  0x1e   :  { %p187_p1 = pnand %p186_p0, %p180_p11 }
  0x20   :  { %190 = shalt.err (!%p187_p1)
}
  0x21   :  { %29 = dma.hbm_to_vmem [thread:$0]  %s274_s1, 256, %s27_s12, [#allocation6]  }
  0x22   :  { %213 = dma.done.wait [#allocation3], 256  }
  0x23   :  { %214 = vsyncadd [#allocation3], 4294967040 }
  0x24   :  { %215 = dma.done.wait [#allocation6], 256  }
  0x25   :  { %216 = vsyncadd [#allocation6], 4294967040  ;;  %v36_v0 = vld [vmem:[#allocation2] sm:$0xff]  ;;  %v37_v1 = vld [vmem:[#allocation2 + $0x8] sm:$0xff]  ;;  %s221_s1 = smov [#allocation7]  }
  0x26   :  { %v40_v2 = vsub.f32 0.0, %v36_v0  ;;  %v41_v3 = vsub.f32 0.0, %v37_v1  ;;  %v38_v46 = vld [vmem:[#allocation5] sm:$0xff]  ;;  %v39_v47 = vld [vmem:[#allocation5 + $0x8] sm:$0xff]  ;;  %s118_s4 = sshll.u32 %s221_s1, 4  ;;  %s119_s4 = int_to_ptr.vmem [resolvable:$true] %s118_s4 }
  0x27   :  { %v102_v48 = vsub.f32 1.0, %v38_v46  ;;  %v103_v50 = vsub.f32 1.0, %v39_v47  ;;  %s191_s5 = scalar_lea.vmem %s119_s4, 256  ;;  %p196_p3 = scmp.lt.s32.totalorder %s119_s4, %s119_s4 }
  0x28   :  { %v48_v4 = vand.u32 2147483647, %v40_v2  ;;  %v49_v5 = vand.u32 2147483647, %v41_v3  ;;  %v42_v22 = vmax.f32 %v40_v2, 0.0  ;;  %v43_v26 = vmax.f32 %v41_v3, 0.0  ;;  %p192_p2 = scmp.ne.s32.totalorder %s119_s4, %s191_s5  ;;  %p197_p4 = scmp.lt.s32.totalorder %s191_s5, %s191_s5 }
  0x29   :  { %vm44_vm2 = vcmp.ne.f32.partialorder %v40_v2, %v40_v2  ;;  %vm45_vm3 = vcmp.ne.f32.partialorder %v41_v3, %v41_v3 }
  0x2a   :  { %v50_v6 = vsub.f32 0.0, %v48_v4  ;;  %v51_v7 = vsub.f32 0.0, %v49_v5  ;;  %p198_p5 = por %p197_p4, %p196_p3 }
  0x2c   :  { %v52_v8 = vmul.f32 1.442695, %v50_v6  ;;  %v54_v9 = vmul.f32 1.442695, %v51_v7  ;;  %p199_p6 = pnand %p198_p5, %p192_p2 }
  0x2e   :  { %131 = vpow2.f32 %v52_v8 }
  0x2f   :  { %133 = vpow2.f32 %v54_v9 }
  0x38   :  { %v132_v10 = vpop.eup %131 }
  0x39   :  { %v134_v11 = vpop.eup %133  ;;  %v56_v12 = vadd.f32 1.0, %v132_v10  ;;  %v59_v14 = vmul.f32 -0.5, %v132_v10  ;;  %v62_v17 = vand.u32 2147483647, %v132_v10 }
  0x3a   :  { %v65_v13 = vadd.f32 1.0, %v134_v11  ;;  %v68_v15 = vmul.f32 -0.5, %v134_v11  ;;  %v71_v19 = vand.u32 2147483647, %v134_v11 }
  0x3b   :  { %135 = vlog2.f32 %v56_v12  ;;  %v60_v16 = vadd.f32 1.0, %v59_v14  ;;  %vm63_vm0 = vcmp.lt.f32.partialorder %v62_v17, 0.0004427343 }
  0x3c   :  { %137 = vlog2.f32 %v65_v13  ;;  %v69_v18 = vadd.f32 1.0, %v68_v15  ;;  %vm72_vm1 = vcmp.lt.f32.partialorder %v71_v19, 0.0004427343 }
  0x3d   :  { %v61_v20 = vmul.f32 %v132_v10, %v60_v16 }
  0x3e   :  { %v70_v23 = vmul.f32 %v134_v11, %v69_v18 }
  0x45   :  { %v136_v21 = vpop.eup %135 }
  0x46   :  { %v138_v24 = vpop.eup %137  ;;  %v58_v25 = vmul.f32 0.6931472, %v136_v21 }
  0x47   :  { %v67_v27 = vmul.f32 0.6931472, %v138_v24 }
  0x48   :  { %v64_v28 = vsel %vm63_vm0, %v61_v20, %v58_v25 }
  0x49   :  { %v74_v29 = vadd.f32 %v64_v28, %v42_v22  ;;  %v73_v30 = vsel %vm72_vm1, %v70_v23, %v67_v27 }
  0x4a   :  { %v75_v31 = vadd.f32 %v73_v30, %v43_v26 }
  0x4b   :  { %v76_v32 = vsel %vm44_vm2, %v40_v2, %v74_v29 }
  0x4c   :  { %v78_v33 = vsub.f32 0.0, %v76_v32  ;;  %v77_v34 = vsel %vm45_vm3, %v41_v3, %v75_v31 }
  0x4d   :  { %v79_v35 = vsub.f32 0.0, %v77_v34 }
  0x4e   :  { %v80_v36 = vsub.f32 %v78_v33, %v36_v0  ;;  %v88_v37 = vmul.f32 2.0, %v78_v33 }
  0x4f   :  { %v81_v38 = vsub.f32 %v79_v35, %v37_v1  ;;  %v89_v39 = vmul.f32 2.0, %v79_v35 }
  0x50   :  { %v82_v40 = vmul.f32 2.0, %v80_v36  ;;  %v90_v41 = vmul.f32 1.442695, %v88_v37 }
  0x51   :  { %v83_v42 = vmul.f32 2.0, %v81_v38  ;;  %v92_v43 = vmul.f32 1.442695, %v89_v39 }
  0x52   :  { %v84_v44 = vmul.f32 1.442695, %v82_v40  ;;  %139 = vpow2.f32 %v90_v41 }
  0x53   :  { %v86_v45 = vmul.f32 1.442695, %v83_v42  ;;  %141 = vpow2.f32 %v92_v43 }
  0x54   :  { %143 = vpow2.f32 %v84_v44 }
  0x55   :  { %145 = vpow2.f32 %v86_v45 }
  0x5c   :  { %v140_v49 = vpop.eup %139 }
  0x5d   :  { %v142_v51 = vpop.eup %141  ;;  %v100_v52 = vmul.f32 0.75, %v140_v49 }
  0x5e   :  { %v144_v53 = vpop.eup %143  ;;  %v101_v54 = vmul.f32 0.75, %v142_v51 }
  0x5f   :  { %v146_v55 = vpop.eup %145  ;;  %v94_v56 = vmul.f32 -0.25, %v144_v53  ;;  %v104_v57 = vmul.f32 %v102_v48, %v100_v52 }
  0x60   :  { %v95_v58 = vmul.f32 -0.25, %v146_v55  ;;  %v105_v59 = vmul.f32 %v103_v50, %v101_v54 }
  0x61   :  { %v96_v60 = vmul.f32 %v94_v56, %v38_v46  ;;  %v106_v61 = vmul.f32 %v104_v57, %v80_v36 }
  0x62   :  { %v97_v62 = vmul.f32 %v95_v58, %v39_v47  ;;  %v107_v63 = vmul.f32 %v105_v59, %v81_v38 }
  0x63   :  { %v98_v0 = vmul.f32 %v96_v60, %v78_v33 }
  0x64   :  { %v99_v1 = vmul.f32 %v97_v62, %v79_v35 }
  0x65   :  { %v108_v2 = vsub.f32 %v98_v0, %v106_v61 }
  0x66   :  { %v109_v3 = vsub.f32 %v99_v1, %v107_v63 }
  0x67   :  { %110 = vst [vmem:[#allocation7] sm:$0xff] %v108_v2 }
  0x68   :  { %111 = vst [vmem:[#allocation7 + $0x8] sm:$0xff] %v109_v3 }
  0x69   :  { %202 = shalt.err (!%p199_p6)
}
  0x6a   :  { %s203_s8 = scalar_lea.hbm %s275_s2, 256 }
  0x6b   :  { %p204_p7 = scmp.ne.s32.totalorder %s275_s2, %s203_s8  ;;  %p207_p8 = scmp.lt.u32.totalorder %s203_s8, %s275_s2 }
  0x6d   :  { %p209_p9 = pnand %p207_p8, %p204_p7 }
  0x6f   :  { %212 = shalt.err (!%p209_p9)
}
  0x70   :  { %121 = dma.vmem_to_hbm [thread:$0]  %s119_s4, 256, %s275_s2, [#allocation4]  }
  0x71   :  { %217 = dma.done.wait [#allocation4], 256  }
  0x72   :  { %218 = vsyncadd [#allocation4], 4294967040 }
  0x73   :  { %125 = vsyncpa [#allocation3], 1 }
  0x74   :  { %126 = vsyncpa [#allocation6], 1 }
  0x75   :  { %127 = vsyncpa [#allocation4], 1 }

</bundles_post_ra>
